<compile_context>
chip_gen: v6e
topology: v6e:2x2x1
jax: 0.10.0
libtpu: 0.0.40
codegen_flags: <defaults>
</compile_context>

<pallas_src>
import jax
import jax.numpy as jnp
from jax.experimental import pallas as pl
from jax.experimental.pallas import tpu as pltpu
import numpy as np

LANES = 128   # samples per tile, on the lane axis

# packed-parameter layout (46 f32 scalars in SMEM)
W1_OFF = 0          # w1[0, j]        j = 0..4
B1_OFF = 5          # b1[j]
W2_OFF = 10         # w2[j, k] row-major over (in=5, out=5) -> 10 + j*5 + k
B2_OFF = 35         # b2[k]
W3_OFF = 40         # w3[k, 0]
B3_OFF = 45         # b3[0]
N_PARAMS = 46


def _mlp_kernel(x_ref, p_ref, o_ref):
    """x_ref/o_ref: (1, 1, 128) VMEM tile (samples on lanes); p_ref: (46,) f32 SMEM."""
    x = x_ref[...]

    # Hoisted, pre-broadcast constants for the unrolled GELU loop.
    half = jnp.full(x.shape, 0.5, jnp.float32)
    one = jnp.full(x.shape, 1.0, jnp.float32)
    inv_sqrt2 = jnp.full(x.shape, 0.7071067811865476, jnp.float32)

    # ---- layer 1: Linear(1, 5) + Sigmoid  (5 scalar-x-vector MACs, sigmoid on EUP) ----
    h = []
    for j in range(5):
        z = x * p_ref[W1_OFF + j] + p_ref[B1_OFF + j]
        h.append(jax.nn.sigmoid(z))

    # ---- layer 2: Linear(5, 5) + exact (erf) GELU  (25 MACs) ----
    g = []
    for k in range(5):
        z = h[0] * p_ref[W2_OFF + k]
        for j in range(1, 5):
            z = z + h[j] * p_ref[W2_OFF + j * 5 + k]
        z = z + p_ref[B2_OFF + k]
        g.append(half * z * (one + jax.lax.erf(z * inv_sqrt2)))

    # ---- layer 3: Linear(5, 1)  (5 MACs) ----
    y = g[0] * p_ref[W3_OFF + 0]
    for k in range(1, 5):
        y = y + g[k] * p_ref[W3_OFF + k]
    o_ref[...] = y + p_ref[B3_OFF]


def pack_params(params):
    """Done ONCE (outside the per-call path): flatten the 46 real scalars."""
    w1, b1, w2, b2, w3, b3 = params
    return jnp.concatenate([
        w1.reshape(-1),   # (1,5) -> 5   : w1[0, j]
        b1.reshape(-1),   # 5
        w2.reshape(-1),   # (5,5) -> 25  : w2[j, k] row-major
        b2.reshape(-1),   # 5
        w3.reshape(-1),   # (5,1) -> 5   : w3[k, 0]
        b3.reshape(-1),   # 1
    ]).astype(jnp.float32)


@jax.jit
def device_3_forward(x, packed_params):
    """x: [N, 1] float32 (any N) -> [N, 1] float32."""
    n = x.shape[0]
    n_tiles = -(-n // LANES)            # static ceil(N / 128)
    padded = n_tiles * LANES

    # samples -> lane axis of (n_tiles, 1, 128) tiles; single pad op (no DUS)
    x_lane = jnp.pad(x[:, 0].astype(jnp.float32),
                     (0, padded - n)).reshape(n_tiles, 1, LANES)

    out = pl.pallas_call(
        _mlp_kernel,
        out_shape=jax.ShapeDtypeStruct((n_tiles, 1, LANES), jnp.float32),
        grid=(n_tiles,),
        in_specs=[
            pl.BlockSpec((1, 1, LANES), lambda i: (i, 0, 0)),        # activation tile
            pl.BlockSpec(memory_space=pltpu.MemorySpace.SMEM),       # 46 packed scalars
        ],
        out_specs=pl.BlockSpec((1, 1, LANES), lambda i: (i, 0, 0)),
        compiler_params=pltpu.CompilerParams(
            dimension_semantics=("parallel",)),                      # v7x: 2 TCs split tiles
    )(x_lane, packed_params)

    return out.reshape(padded)[:n].reshape(n, 1)


def init_params(key):
    """Deterministic init mirroring torch.nn.Linear's U(-1/sqrt(fan_in), +) init."""
    ks = jax.random.split(key, 6)

    def lin(kw, kb, fan_in, fan_out):
        bound = 1.0 / np.sqrt(fan_in)
        w = jax.random.uniform(kw, (fan_in, fan_out), jnp.float32, -bound, bound)
        b = jax.random.uniform(kb, (fan_out,), jnp.float32, -bound, bound)
        return w, b

    w1, b1 = lin(ks[0], ks[1], 1, 5)
    w2, b2 = lin(ks[2], ks[3], 5, 5)
    w3, b3 = lin(ks[4], ks[5], 5, 1)
    return (w1, b1, w2, b2, w3, b3)


def reference_forward(x, params):
    w1, b1, w2, b2, w3, b3 = params
    h = x @ w1 + b1
    h = jax.nn.sigmoid(h)
    h = h @ w2 + b2
    h = jax.nn.gelu(h, approximate=False)
    h = h @ w3 + b3
    return h


if __name__ == "__main__":
    key = jax.random.PRNGKey(0)
    params = init_params(key)
    packed = pack_params(params)          # hoisted out of the forward path

    # Same input as the PyTorch snippet: [-7, ..., 7] reshaped to (15, 1)
    x = jnp.arange(-7, 8, dtype=jnp.float32).reshape(-1, 1)
    out = jax.block_until_ready(device_3_forward(x, packed))
    ref = reference_forward(x, params)
    np.testing.assert_allclose(np.asarray(out), np.asarray(ref), rtol=1e-5, atol=1e-5)

    # Exercise the multi-tile grid path (N > 128 -> 3 lane tiles across the grid).
    x_big = jax.random.normal(jax.random.PRNGKey(1), (300, 1), jnp.float32) * 4.0
    out_big = jax.block_until_ready(device_3_forward(x_big, packed))
    ref_big = reference_forward(x_big, params)
    np.testing.assert_allclose(np.asarray(out_big), np.asarray(ref_big),
                               rtol=1e-5, atol=1e-5)

    print("KERNEL_OK")
</pallas_src>

<mosaic_0001>
module attributes {stable_mosaic.version = 11 : i64} {
  func.func @_mlp_kernel(%arg0: i32, %arg1: memref<1x1x128xf32, #tpu.memory_space<vmem>>, %arg2: memref<46xf32, #tpu.memory_space<smem>>, %arg3: memref<1x1x128xf32, #tpu.memory_space<vmem>>) attributes {dimension_semantics = [#tpu.dimension_semantics<parallel>], iteration_bounds = array<i64: 1>, scalar_prefetch = 0 : i64, scratch_operands = 0 : i64, tpu.core_type = #tpu.core_type<tc>, window_params = [{transform_indices = @transform_0, window_bounds = array<i64: 1, 1, 128>}, {transform_indices = @transform_1, window_bounds = array<i64: 46>}, {transform_indices = @transform_2, window_bounds = array<i64: 1, 1, 128>}]} {
    %c0 = arith.constant 0 : index
    %c0_0 = arith.constant 0 : index
    %c0_1 = arith.constant 0 : index
    %0 = vector.load %arg1[%c0, %c0_0, %c0_1] : memref<1x1x128xf32, #tpu.memory_space<vmem>>, vector<1x1x128xf32>
    %cst = arith.constant 5.000000e-01 : f32
    %1 = vector.broadcast %cst : f32 to vector<1x1x128xf32>
    %cst_2 = arith.constant 1.000000e+00 : f32
    %2 = vector.broadcast %cst_2 : f32 to vector<1x1x128xf32>
    %cst_3 = arith.constant 0.707106769 : f32
    %3 = vector.broadcast %cst_3 : f32 to vector<1x1x128xf32>
    %c0_4 = arith.constant 0 : index
    %4 = memref.load %arg2[%c0_4] : memref<46xf32, #tpu.memory_space<smem>>
    %5 = vector.broadcast %4 : f32 to vector<1x1x128xf32>
    %6 = arith.mulf %0, %5 : vector<1x1x128xf32>
    %c5 = arith.constant 5 : index
    %7 = memref.load %arg2[%c5] : memref<46xf32, #tpu.memory_space<smem>>
    %8 = vector.broadcast %7 : f32 to vector<1x1x128xf32>
    %9 = arith.addf %6, %8 : vector<1x1x128xf32>
    %10 = arith.negf %9 : vector<1x1x128xf32>
    %11 = math.exp %10 : vector<1x1x128xf32>
    %cst_5 = arith.constant 1.000000e+00 : f32
    %12 = vector.broadcast %cst_5 : f32 to vector<1x1x128xf32>
    %13 = arith.addf %12, %11 : vector<1x1x128xf32>
    %14 = arith.divf %12, %13 : vector<1x1x128xf32>
    %c1 = arith.constant 1 : index
    %15 = memref.load %arg2[%c1] : memref<46xf32, #tpu.memory_space<smem>>
    %16 = vector.broadcast %15 : f32 to vector<1x1x128xf32>
    %17 = arith.mulf %0, %16 : vector<1x1x128xf32>
    %c6 = arith.constant 6 : index
    %18 = memref.load %arg2[%c6] : memref<46xf32, #tpu.memory_space<smem>>
    %19 = vector.broadcast %18 : f32 to vector<1x1x128xf32>
    %20 = arith.addf %17, %19 : vector<1x1x128xf32>
    %21 = arith.negf %20 : vector<1x1x128xf32>
    %22 = math.exp %21 : vector<1x1x128xf32>
    %cst_6 = arith.constant 1.000000e+00 : f32
    %23 = vector.broadcast %cst_6 : f32 to vector<1x1x128xf32>
    %24 = arith.addf %23, %22 : vector<1x1x128xf32>
    %25 = arith.divf %23, %24 : vector<1x1x128xf32>
    %c2 = arith.constant 2 : index
    %26 = memref.load %arg2[%c2] : memref<46xf32, #tpu.memory_space<smem>>
    %27 = vector.broadcast %26 : f32 to vector<1x1x128xf32>
    %28 = arith.mulf %0, %27 : vector<1x1x128xf32>
    %c7 = arith.constant 7 : index
    %29 = memref.load %arg2[%c7] : memref<46xf32, #tpu.memory_space<smem>>
    %30 = vector.broadcast %29 : f32 to vector<1x1x128xf32>
    %31 = arith.addf %28, %30 : vector<1x1x128xf32>
    %32 = arith.negf %31 : vector<1x1x128xf32>
    %33 = math.exp %32 : vector<1x1x128xf32>
    %cst_7 = arith.constant 1.000000e+00 : f32
    %34 = vector.broadcast %cst_7 : f32 to vector<1x1x128xf32>
    %35 = arith.addf %34, %33 : vector<1x1x128xf32>
    %36 = arith.divf %34, %35 : vector<1x1x128xf32>
    %c3 = arith.constant 3 : index
    %37 = memref.load %arg2[%c3] : memref<46xf32, #tpu.memory_space<smem>>
    %38 = vector.broadcast %37 : f32 to vector<1x1x128xf32>
    %39 = arith.mulf %0, %38 : vector<1x1x128xf32>
    %c8 = arith.constant 8 : index
    %40 = memref.load %arg2[%c8] : memref<46xf32, #tpu.memory_space<smem>>
    %41 = vector.broadcast %40 : f32 to vector<1x1x128xf32>
    %42 = arith.addf %39, %41 : vector<1x1x128xf32>
    %43 = arith.negf %42 : vector<1x1x128xf32>
    %44 = math.exp %43 : vector<1x1x128xf32>
    %cst_8 = arith.constant 1.000000e+00 : f32
    %45 = vector.broadcast %cst_8 : f32 to vector<1x1x128xf32>
    %46 = arith.addf %45, %44 : vector<1x1x128xf32>
    %47 = arith.divf %45, %46 : vector<1x1x128xf32>
    %c4 = arith.constant 4 : index
    %48 = memref.load %arg2[%c4] : memref<46xf32, #tpu.memory_space<smem>>
    %49 = vector.broadcast %48 : f32 to vector<1x1x128xf32>
    %50 = arith.mulf %0, %49 : vector<1x1x128xf32>
    %c9 = arith.constant 9 : index
    %51 = memref.load %arg2[%c9] : memref<46xf32, #tpu.memory_space<smem>>
    %52 = vector.broadcast %51 : f32 to vector<1x1x128xf32>
    %53 = arith.addf %50, %52 : vector<1x1x128xf32>
    %54 = arith.negf %53 : vector<1x1x128xf32>
    %55 = math.exp %54 : vector<1x1x128xf32>
    %cst_9 = arith.constant 1.000000e+00 : f32
    %56 = vector.broadcast %cst_9 : f32 to vector<1x1x128xf32>
    %57 = arith.addf %56, %55 : vector<1x1x128xf32>
    %58 = arith.divf %56, %57 : vector<1x1x128xf32>
    %c10 = arith.constant 10 : index
    %59 = memref.load %arg2[%c10] : memref<46xf32, #tpu.memory_space<smem>>
    %60 = vector.broadcast %59 : f32 to vector<1x1x128xf32>
    %61 = arith.mulf %14, %60 : vector<1x1x128xf32>
    %c15 = arith.constant 15 : index
    %62 = memref.load %arg2[%c15] : memref<46xf32, #tpu.memory_space<smem>>
    %63 = vector.broadcast %62 : f32 to vector<1x1x128xf32>
    %64 = arith.mulf %25, %63 : vector<1x1x128xf32>
    %65 = arith.addf %61, %64 : vector<1x1x128xf32>
    %c20 = arith.constant 20 : index
    %66 = memref.load %arg2[%c20] : memref<46xf32, #tpu.memory_space<smem>>
    %67 = vector.broadcast %66 : f32 to vector<1x1x128xf32>
    %68 = arith.mulf %36, %67 : vector<1x1x128xf32>
    %69 = arith.addf %65, %68 : vector<1x1x128xf32>
    %c25 = arith.constant 25 : index
    %70 = memref.load %arg2[%c25] : memref<46xf32, #tpu.memory_space<smem>>
    %71 = vector.broadcast %70 : f32 to vector<1x1x128xf32>
    %72 = arith.mulf %47, %71 : vector<1x1x128xf32>
    %73 = arith.addf %69, %72 : vector<1x1x128xf32>
    %c30 = arith.constant 30 : index
    %74 = memref.load %arg2[%c30] : memref<46xf32, #tpu.memory_space<smem>>
    %75 = vector.broadcast %74 : f32 to vector<1x1x128xf32>
    %76 = arith.mulf %58, %75 : vector<1x1x128xf32>
    %77 = arith.addf %73, %76 : vector<1x1x128xf32>
    %c35 = arith.constant 35 : index
    %78 = memref.load %arg2[%c35] : memref<46xf32, #tpu.memory_space<smem>>
    %79 = vector.broadcast %78 : f32 to vector<1x1x128xf32>
    %80 = arith.addf %77, %79 : vector<1x1x128xf32>
    %81 = arith.mulf %1, %80 : vector<1x1x128xf32>
    %82 = arith.mulf %80, %3 : vector<1x1x128xf32>
    %83 = math.erf %82 : vector<1x1x128xf32>
    %84 = arith.addf %2, %83 : vector<1x1x128xf32>
    %85 = arith.mulf %81, %84 : vector<1x1x128xf32>
    %c11 = arith.constant 11 : index
    %86 = memref.load %arg2[%c11] : memref<46xf32, #tpu.memory_space<smem>>
    %87 = vector.broadcast %86 : f32 to vector<1x1x128xf32>
    %88 = arith.mulf %14, %87 : vector<1x1x128xf32>
    %c16 = arith.constant 16 : index
    %89 = memref.load %arg2[%c16] : memref<46xf32, #tpu.memory_space<smem>>
    %90 = vector.broadcast %89 : f32 to vector<1x1x128xf32>
    %91 = arith.mulf %25, %90 : vector<1x1x128xf32>
    %92 = arith.addf %88, %91 : vector<1x1x128xf32>
    %c21 = arith.constant 21 : index
    %93 = memref.load %arg2[%c21] : memref<46xf32, #tpu.memory_space<smem>>
    %94 = vector.broadcast %93 : f32 to vector<1x1x128xf32>
    %95 = arith.mulf %36, %94 : vector<1x1x128xf32>
    %96 = arith.addf %92, %95 : vector<1x1x128xf32>
    %c26 = arith.constant 26 : index
    %97 = memref.load %arg2[%c26] : memref<46xf32, #tpu.memory_space<smem>>
    %98 = vector.broadcast %97 : f32 to vector<1x1x128xf32>
    %99 = arith.mulf %47, %98 : vector<1x1x128xf32>
    %100 = arith.addf %96, %99 : vector<1x1x128xf32>
    %c31 = arith.constant 31 : index
    %101 = memref.load %arg2[%c31] : memref<46xf32, #tpu.memory_space<smem>>
    %102 = vector.broadcast %101 : f32 to vector<1x1x128xf32>
    %103 = arith.mulf %58, %102 : vector<1x1x128xf32>
    %104 = arith.addf %100, %103 : vector<1x1x128xf32>
    %c36 = arith.constant 36 : index
    %105 = memref.load %arg2[%c36] : memref<46xf32, #tpu.memory_space<smem>>
    %106 = vector.broadcast %105 : f32 to vector<1x1x128xf32>
    %107 = arith.addf %104, %106 : vector<1x1x128xf32>
    %108 = arith.mulf %1, %107 : vector<1x1x128xf32>
    %109 = arith.mulf %107, %3 : vector<1x1x128xf32>
    %110 = math.erf %109 : vector<1x1x128xf32>
    %111 = arith.addf %2, %110 : vector<1x1x128xf32>
    %112 = arith.mulf %108, %111 : vector<1x1x128xf32>
    %c12 = arith.constant 12 : index
    %113 = memref.load %arg2[%c12] : memref<46xf32, #tpu.memory_space<smem>>
    %114 = vector.broadcast %113 : f32 to vector<1x1x128xf32>
    %115 = arith.mulf %14, %114 : vector<1x1x128xf32>
    %c17 = arith.constant 17 : index
    %116 = memref.load %arg2[%c17] : memref<46xf32, #tpu.memory_space<smem>>
    %117 = vector.broadcast %116 : f32 to vector<1x1x128xf32>
    %118 = arith.mulf %25, %117 : vector<1x1x128xf32>
    %119 = arith.addf %115, %118 : vector<1x1x128xf32>
    %c22 = arith.constant 22 : index
    %120 = memref.load %arg2[%c22] : memref<46xf32, #tpu.memory_space<smem>>
    %121 = vector.broadcast %120 : f32 to vector<1x1x128xf32>
    %122 = arith.mulf %36, %121 : vector<1x1x128xf32>
    %123 = arith.addf %119, %122 : vector<1x1x128xf32>
    %c27 = arith.constant 27 : index
    %124 = memref.load %arg2[%c27] : memref<46xf32, #tpu.memory_space<smem>>
    %125 = vector.broadcast %124 : f32 to vector<1x1x128xf32>
    %126 = arith.mulf %47, %125 : vector<1x1x128xf32>
    %127 = arith.addf %123, %126 : vector<1x1x128xf32>
    %c32 = arith.constant 32 : index
    %128 = memref.load %arg2[%c32] : memref<46xf32, #tpu.memory_space<smem>>
    %129 = vector.broadcast %128 : f32 to vector<1x1x128xf32>
    %130 = arith.mulf %58, %129 : vector<1x1x128xf32>
    %131 = arith.addf %127, %130 : vector<1x1x128xf32>
    %c37 = arith.constant 37 : index
    %132 = memref.load %arg2[%c37] : memref<46xf32, #tpu.memory_space<smem>>
    %133 = vector.broadcast %132 : f32 to vector<1x1x128xf32>
    %134 = arith.addf %131, %133 : vector<1x1x128xf32>
    %135 = arith.mulf %1, %134 : vector<1x1x128xf32>
    %136 = arith.mulf %134, %3 : vector<1x1x128xf32>
    %137 = math.erf %136 : vector<1x1x128xf32>
    %138 = arith.addf %2, %137 : vector<1x1x128xf32>
    %139 = arith.mulf %135, %138 : vector<1x1x128xf32>
    %c13 = arith.constant 13 : index
    %140 = memref.load %arg2[%c13] : memref<46xf32, #tpu.memory_space<smem>>
    %141 = vector.broadcast %140 : f32 to vector<1x1x128xf32>
    %142 = arith.mulf %14, %141 : vector<1x1x128xf32>
    %c18 = arith.constant 18 : index
    %143 = memref.load %arg2[%c18] : memref<46xf32, #tpu.memory_space<smem>>
    %144 = vector.broadcast %143 : f32 to vector<1x1x128xf32>
    %145 = arith.mulf %25, %144 : vector<1x1x128xf32>
    %146 = arith.addf %142, %145 : vector<1x1x128xf32>
    %c23 = arith.constant 23 : index
    %147 = memref.load %arg2[%c23] : memref<46xf32, #tpu.memory_space<smem>>
    %148 = vector.broadcast %147 : f32 to vector<1x1x128xf32>
    %149 = arith.mulf %36, %148 : vector<1x1x128xf32>
    %150 = arith.addf %146, %149 : vector<1x1x128xf32>
    %c28 = arith.constant 28 : index
    %151 = memref.load %arg2[%c28] : memref<46xf32, #tpu.memory_space<smem>>
    %152 = vector.broadcast %151 : f32 to vector<1x1x128xf32>
    %153 = arith.mulf %47, %152 : vector<1x1x128xf32>
    %154 = arith.addf %150, %153 : vector<1x1x128xf32>
    %c33 = arith.constant 33 : index
    %155 = memref.load %arg2[%c33] : memref<46xf32, #tpu.memory_space<smem>>
    %156 = vector.broadcast %155 : f32 to vector<1x1x128xf32>
    %157 = arith.mulf %58, %156 : vector<1x1x128xf32>
    %158 = arith.addf %154, %157 : vector<1x1x128xf32>
    %c38 = arith.constant 38 : index
    %159 = memref.load %arg2[%c38] : memref<46xf32, #tpu.memory_space<smem>>
    %160 = vector.broadcast %159 : f32 to vector<1x1x128xf32>
    %161 = arith.addf %158, %160 : vector<1x1x128xf32>
    %162 = arith.mulf %1, %161 : vector<1x1x128xf32>
    %163 = arith.mulf %161, %3 : vector<1x1x128xf32>
    %164 = math.erf %163 : vector<1x1x128xf32>
    %165 = arith.addf %2, %164 : vector<1x1x128xf32>
    %166 = arith.mulf %162, %165 : vector<1x1x128xf32>
    %c14 = arith.constant 14 : index
    %167 = memref.load %arg2[%c14] : memref<46xf32, #tpu.memory_space<smem>>
    %168 = vector.broadcast %167 : f32 to vector<1x1x128xf32>
    %169 = arith.mulf %14, %168 : vector<1x1x128xf32>
    %c19 = arith.constant 19 : index
    %170 = memref.load %arg2[%c19] : memref<46xf32, #tpu.memory_space<smem>>
    %171 = vector.broadcast %170 : f32 to vector<1x1x128xf32>
    %172 = arith.mulf %25, %171 : vector<1x1x128xf32>
    %173 = arith.addf %169, %172 : vector<1x1x128xf32>
    %c24 = arith.constant 24 : index
    %174 = memref.load %arg2[%c24] : memref<46xf32, #tpu.memory_space<smem>>
    %175 = vector.broadcast %174 : f32 to vector<1x1x128xf32>
    %176 = arith.mulf %36, %175 : vector<1x1x128xf32>
    %177 = arith.addf %173, %176 : vector<1x1x128xf32>
    %c29 = arith.constant 29 : index
    %178 = memref.load %arg2[%c29] : memref<46xf32, #tpu.memory_space<smem>>
    %179 = vector.broadcast %178 : f32 to vector<1x1x128xf32>
    %180 = arith.mulf %47, %179 : vector<1x1x128xf32>
    %181 = arith.addf %177, %180 : vector<1x1x128xf32>
    %c34 = arith.constant 34 : index
    %182 = memref.load %arg2[%c34] : memref<46xf32, #tpu.memory_space<smem>>
    %183 = vector.broadcast %182 : f32 to vector<1x1x128xf32>
    %184 = arith.mulf %58, %183 : vector<1x1x128xf32>
    %185 = arith.addf %181, %184 : vector<1x1x128xf32>
    %c39 = arith.constant 39 : index
    %186 = memref.load %arg2[%c39] : memref<46xf32, #tpu.memory_space<smem>>
    %187 = vector.broadcast %186 : f32 to vector<1x1x128xf32>
    %188 = arith.addf %185, %187 : vector<1x1x128xf32>
    %189 = arith.mulf %1, %188 : vector<1x1x128xf32>
    %190 = arith.mulf %188, %3 : vector<1x1x128xf32>
    %191 = math.erf %190 : vector<1x1x128xf32>
    %192 = arith.addf %2, %191 : vector<1x1x128xf32>
    %193 = arith.mulf %189, %192 : vector<1x1x128xf32>
    %c40 = arith.constant 40 : index
    %194 = memref.load %arg2[%c40] : memref<46xf32, #tpu.memory_space<smem>>
    %195 = vector.broadcast %194 : f32 to vector<1x1x128xf32>
    %196 = arith.mulf %85, %195 : vector<1x1x128xf32>
    %c41 = arith.constant 41 : index
    %197 = memref.load %arg2[%c41] : memref<46xf32, #tpu.memory_space<smem>>
    %198 = vector.broadcast %197 : f32 to vector<1x1x128xf32>
    %199 = arith.mulf %112, %198 : vector<1x1x128xf32>
    %200 = arith.addf %196, %199 : vector<1x1x128xf32>
    %c42 = arith.constant 42 : index
    %201 = memref.load %arg2[%c42] : memref<46xf32, #tpu.memory_space<smem>>
    %202 = vector.broadcast %201 : f32 to vector<1x1x128xf32>
    %203 = arith.mulf %139, %202 : vector<1x1x128xf32>
    %204 = arith.addf %200, %203 : vector<1x1x128xf32>
    %c43 = arith.constant 43 : index
    %205 = memref.load %arg2[%c43] : memref<46xf32, #tpu.memory_space<smem>>
    %206 = vector.broadcast %205 : f32 to vector<1x1x128xf32>
    %207 = arith.mulf %166, %206 : vector<1x1x128xf32>
    %208 = arith.addf %204, %207 : vector<1x1x128xf32>
    %c44 = arith.constant 44 : index
    %209 = memref.load %arg2[%c44] : memref<46xf32, #tpu.memory_space<smem>>
    %210 = vector.broadcast %209 : f32 to vector<1x1x128xf32>
    %211 = arith.mulf %193, %210 : vector<1x1x128xf32>
    %212 = arith.addf %208, %211 : vector<1x1x128xf32>
    %c45 = arith.constant 45 : index
    %213 = memref.load %arg2[%c45] : memref<46xf32, #tpu.memory_space<smem>>
    %214 = vector.broadcast %213 : f32 to vector<1x1x128xf32>
    %215 = arith.addf %212, %214 : vector<1x1x128xf32>
    %c0_10 = arith.constant 0 : index
    %c0_11 = arith.constant 0 : index
    %c0_12 = arith.constant 0 : index
    %216 = vector.load %arg3[%c0_10, %c0_11, %c0_12] : memref<1x1x128xf32, #tpu.memory_space<vmem>>, vector<1x1x128xf32>
    tpu.vector_store %arg3[%c0_10, %c0_11, %c0_12], %215 {strides = array<i32>} : memref<1x1x128xf32, #tpu.memory_space<vmem>>, vector<1x1x128xf32>,
    return
  }
  func.func @transform_0(%arg0: i32) -> (i32, i32, i32) {
    %c0_i32 = arith.constant 0 : i32
    %c0_i32_0 = arith.constant 0 : i32
    %c0_i32_1 = arith.constant 0 : i32
    return %arg0, %c0_i32, %c0_i32_0 : i32, i32, i32
  }
  func.func @transform_1(%arg0: i32) -> i32 {
    %c0_i32 = arith.constant 0 : i32
    %c0_i32_0 = arith.constant 0 : i32
    return %c0_i32 : i32
  }
  func.func @transform_2(%arg0: i32) -> (i32, i32, i32) {
    %c0_i32 = arith.constant 0 : i32
    %c0_i32_0 = arith.constant 0 : i32
    %c0_i32_1 = arith.constant 0 : i32
    return %arg0, %c0_i32, %c0_i32_0 : i32, i32, i32
  }
}

</mosaic_0001>

<bundles_post_ra>
// kernel: device_3_forward.1
= control target key start
LH: loop header
LB: loop body
LE: loop exit
PB: predicated region body
PF: predicated region fallthrough
CT: control target
= control target key end

     0   :  { %7 = vsyncpa [#allocation3], 0  ;;  %s459_s0 = inlined_call_operand.vmem [shape: f32[1,1,128], index: 0, kind: input, shape index: {}]   ;;  %s460_s1 = inlined_call_operand.vmem [shape: f32[46], index: 1, kind: input, shape index: {}]   ;;  %s461_s2 = inlined_call_operand.vmem [shape: f32[1,1,128], index: 2, kind: output, shape index: {}]  }
   0x1   :  { %s16_s11 = sshll.u32 %s460_s1, 4  ;;  %s17_s11 = int_to_ptr.vmem [resolvable:$true] %s16_s11 }
   0x2   :  { %s329_s12 = scalar_lea.vmem %s17_s11, 16  ;;  %p334_p1 = scmp.lt.s32.totalorder %s17_s11, %s17_s11 }
   0x3   :  { %p330_p0 = scmp.ne.s32.totalorder %s17_s11, %s329_s12  ;;  %p335_p2 = scmp.lt.s32.totalorder %s329_s12, %s329_s12 }
   0x5   :  { %p336_p3 = por %p335_p2, %p334_p1 }
   0x7   :  { %p337_p4 = pnand %p336_p3, %p330_p0 }
   0x9   :  { %340 = shalt.err (!%p337_p4)
}
   0xa   :  { %s343_s13 = smov [#allocation2]  }
   0xb   :  { %19 = dma.vmem_to_smem %s17_s11, 16, %s343_s13, [#allocation3]  }
   0xc   :  { %341 = dma.done.wait [#allocation3], 16  }
   0xd   :  { %342 = vsyncadd [#allocation3], 4294967280 }
   0xe   :  { %23 = sfence }
   0xf   :  { %s25_s14 = sld [smem:[#allocation2]]  ;;  %v24_v0 = vld [vmem:[%s459_s0] sm:$0x1] }
  0x10   :  { %s248_s15 = sld [smem:[#allocation2 + $0x5]] }
  0x11   :  { %s250_s16 = sld [smem:[#allocation2 + $0x1]] }
  0x12   :  { %s251_s17 = sld [smem:[#allocation2 + $0x6]] }
  0x13   :  { %s253_s1 = sld [smem:[#allocation2 + $0x2]] }
  0x14   :  { %s254_s20 = sld [smem:[#allocation2 + $0x7]] }
  0x15   :  { %v26_v1 = vstv %s25_s14  ;;  %s256_s21 = sld [smem:[#allocation2 + $0x3]] }
  0x16   :  { %v27_v2 = vmul.f32 %v26_v1, %v24_v0  ;;  %v29_v3 = vstv %s248_s15  ;;  %s257_s22 = sld [smem:[#allocation2 + $0x8]] }
  0x17   :  { %v38_v4 = vstv %s250_s16  ;;  %s259_s23 = sld [smem:[#allocation2 + $0x4]] }
  0x18   :  { %v30_v5 = vadd.f32 %v29_v3, %v27_v2  ;;  %v39_v6 = vmul.f32 %v38_v4, %v24_v0  ;;  %v41_v7 = vstv %s251_s17  ;;  %s260_s24 = sld [smem:[#allocation2 + $0x9]] }
  0x19   :  { %v50_v8 = vstv %s253_s1  ;;  %s365_s25 = sld [smem:[#allocation2 + $0xa]] }
  0x1a   :  { %v249_v9 = vmul.f32 -1.442695, %v30_v5  ;;  %v42_v10 = vadd.f32 %v41_v7, %v39_v6  ;;  %v51_v11 = vmul.f32 %v50_v8, %v24_v0  ;;  %v53_v12 = vstv %s254_s20  ;;  %s367_s0 = sld [smem:[#allocation2 + $0xf]] }
  0x1b   :  { %v62_v13 = vstv %s256_s21  ;;  %s369_s26 = sld [smem:[#allocation2 + $0x14]] }
  0x1c   :  { %299 = vpow2.f32 %v249_v9  ;;  %v252_v14 = vmul.f32 -1.442695, %v42_v10  ;;  %v54_v15 = vadd.f32 %v53_v12, %v51_v11  ;;  %v63_v16 = vmul.f32 %v62_v13, %v24_v0  ;;  %s371_s27 = sld [smem:[#allocation2 + $0x19]] }
  0x1d   :  { %v65_v17 = vstv %s257_s22  ;;  %v74_v18 = vstv %s259_s23  ;;  %s373_s28 = sld [smem:[#allocation2 + $0x1e]] }
  0x1e   :  { %301 = vpow2.f32 %v252_v14  ;;  %v255_v19 = vmul.f32 -1.442695, %v54_v15  ;;  %v66_v20 = vadd.f32 %v65_v17, %v63_v16  ;;  %v75_v21 = vmul.f32 %v74_v18, %v24_v0  ;;  %s375_s29 = sld [smem:[#allocation2 + $0x23]] }
  0x1f   :  { %v77_v22 = vstv %s260_s24  ;;  %s377_s30 = sld [smem:[#allocation2 + $0xb]]  ;;  %v86_v36 = vstv %s365_s25 }
  0x20   :  { %303 = vpow2.f32 %v255_v19  ;;  %v258_v23 = vmul.f32 -1.442695, %v66_v20  ;;  %v78_v24 = vadd.f32 %v77_v22, %v75_v21  ;;  %s379_s3 = sld [smem:[#allocation2 + $0x10]]  ;;  %v89_v37 = vstv %s367_s0 }
  0x21   :  { %s381_s4 = sld [smem:[#allocation2 + $0x15]]  ;;  %v93_v38 = vstv %s369_s26 }
  0x22   :  { %305 = vpow2.f32 %v258_v23  ;;  %v261_v25 = vmul.f32 -1.442695, %v78_v24  ;;  %s383_s5 = sld [smem:[#allocation2 + $0x1a]]  ;;  %v97_v39 = vstv %s371_s27 }
  0x23   :  { %s385_s6 = sld [smem:[#allocation2 + $0x1f]]  ;;  %v101_v40 = vstv %s373_s28 }
  0x24   :  { %307 = vpow2.f32 %v261_v25  ;;  %s387_s7 = sld [smem:[#allocation2 + $0x24]]  ;;  %v105_v41 = vstv %s375_s29 }
  0x25   :  { %s389_s8 = sld [smem:[#allocation2 + $0xc]]  ;;  %v113_v42 = vstv %s377_s30 }
  0x26   :  { %s391_s9 = sld [smem:[#allocation2 + $0x11]]  ;;  %v116_v43 = vstv %s379_s3 }
  0x27   :  { %s393_s10 = sld [smem:[#allocation2 + $0x16]]  ;;  %v120_v44 = vstv %s381_s4 }
  0x28   :  { %s395_s11 = sld [smem:[#allocation2 + $0x1b]]  ;;  %v124_v45 = vstv %s383_s5 }
  0x29   :  { %v300_v26 = vpop.eup %299  ;;  %s397_s12 = sld [smem:[#allocation2 + $0x20]]  ;;  %v128_v46 = vstv %s385_s6 }
  0x2a   :  { %v34_v27 = vadd.f32 1.0, %v300_v26  ;;  %s399_s13 = sld [smem:[#allocation2 + $0x25]]  ;;  %v132_v47 = vstv %s387_s7 }
  0x2b   :  { %v302_v28 = vpop.eup %301  ;;  %s401_s14 = sld [smem:[#allocation2 + $0xd]]  ;;  %v140_v48 = vstv %s389_s8 }
  0x2c   :  { %309 = vrcp.f32 %v34_v27  ;;  %v46_v29 = vadd.f32 1.0, %v302_v28  ;;  %s403_s15 = sld [smem:[#allocation2 + $0x12]]  ;;  %v143_v49 = vstv %s391_s9 }
  0x2d   :  { %v304_v30 = vpop.eup %303  ;;  %s405_s16 = sld [smem:[#allocation2 + $0x17]]  ;;  %v147_v50 = vstv %s393_s10 }
  0x2e   :  { %311 = vrcp.f32 %v46_v29  ;;  %v58_v31 = vadd.f32 1.0, %v304_v30  ;;  %s407_s17 = sld [smem:[#allocation2 + $0x1c]]  ;;  %v151_v51 = vstv %s395_s11 }
  0x2f   :  { %v306_v32 = vpop.eup %305  ;;  %s409_s18 = sld [smem:[#allocation2 + $0x21]]  ;;  %v155_v52 = vstv %s397_s12 }
  0x30   :  { %313 = vrcp.f32 %v58_v31  ;;  %v70_v33 = vadd.f32 1.0, %v306_v32  ;;  %s411_s19 = sld [smem:[#allocation2 + $0xe]]  ;;  %v159_v55 = vstv %s399_s13 }
  0x31   :  { %v308_v34 = vpop.eup %307  ;;  %s413_s1 = sld [smem:[#allocation2 + $0x13]]  ;;  %v167_v53 = vstv %s401_s14 }
  0x32   :  { %315 = vrcp.f32 %v70_v33  ;;  %v82_v35 = vadd.f32 1.0, %v308_v34  ;;  %s415_s20 = sld [smem:[#allocation2 + $0x26]]  ;;  %v170_v56 = vstv %s403_s15 }
  0x33   :  { %s419_s21 = sld [smem:[#allocation2 + $0x18]]  ;;  %v174_v57 = vstv %s405_s16 }
  0x34   :  { %317 = vrcp.f32 %v82_v35  ;;  %s425_s22 = sld [smem:[#allocation2 + $0x1d]]  ;;  %v178_v58 = vstv %s407_s17 }
  0x35   :  { %v182_v2 = vstv %s409_s18  ;;  %s449_s23 = sld [smem:[#allocation2 + $0x22]] }
  0x36   :  { %v194_v61 = vstv %s411_s19  ;;  %s291_s24 = sld [smem:[#allocation2 + $0x27]] }
  0x37   :  { %v197_v62 = vstv %s413_s1  ;;  %s292_s25 = sld [smem:[#allocation2 + $0x28]] }
  0x38   :  { %v186_v3 = vstv %s415_s20  ;;  %s293_s0 = sld [smem:[#allocation2 + $0x29]] }
  0x39   :  { %v310_v54 = vpop.eup %309  ;;  %v201_v11 = vstv %s419_s21  ;;  %s294_s26 = sld [smem:[#allocation2 + $0x2a]] }
  0x3a   :  { %v87_v59 = vmul.f32 %v310_v54, %v86_v36  ;;  %v114_v60 = vmul.f32 %v310_v54, %v113_v42  ;;  %v141_v0 = vmul.f32 %v310_v54, %v140_v48  ;;  %v168_v1 = vmul.f32 %v310_v54, %v167_v53  ;;  %s295_s27 = sld [smem:[#allocation2 + $0x2b]] }
  0x3b   :  { %v312_v63 = vpop.eup %311  ;;  %v195_v9 = vmul.f32 %v310_v54, %v194_v61  ;;  %v205_v12 = vstv %s425_s22  ;;  %s296_s28 = sld [smem:[#allocation2 + $0x2c]] }
  0x3c   :  { %v90_v4 = vmul.f32 %v312_v63, %v89_v37  ;;  %v117_v5 = vmul.f32 %v312_v63, %v116_v43  ;;  %v144_v6 = vmul.f32 %v312_v63, %v143_v49  ;;  %v171_v7 = vmul.f32 %v312_v63, %v170_v56  ;;  %s297_s29 = sld [smem:[#allocation2 + $0x2d]] }
  0x3d   :  { %v314_v8 = vpop.eup %313  ;;  %v198_v10 = vmul.f32 %v312_v63, %v197_v62  ;;  %v209_v49 = vstv %s449_s23  ;;  %v213_v61 = vstv %s291_s24 }
  0x3e   :  { %v91_v13 = vadd.f32 %v90_v4, %v87_v59  ;;  %v94_v14 = vmul.f32 %v314_v8, %v93_v38  ;;  %v118_v15 = vadd.f32 %v117_v5, %v114_v60  ;;  %v121_v16 = vmul.f32 %v314_v8, %v120_v44 }
  0x3f   :  { %v316_v17 = vpop.eup %315  ;;  %v145_v18 = vadd.f32 %v144_v6, %v141_v0  ;;  %v148_v19 = vmul.f32 %v314_v8, %v147_v50  ;;  %v172_v20 = vadd.f32 %v171_v7, %v168_v1  ;;  %v175_v21 = vmul.f32 %v314_v8, %v174_v57 }
  0x40   :  { %v95_v22 = vadd.f32 %v94_v14, %v91_v13  ;;  %v98_v23 = vmul.f32 %v316_v17, %v97_v39  ;;  %v122_v24 = vadd.f32 %v121_v16, %v118_v15  ;;  %v125_v25 = vmul.f32 %v316_v17, %v124_v45 }
  0x41   :  { %v318_v26 = vpop.eup %317  ;;  %v149_v27 = vadd.f32 %v148_v19, %v145_v18  ;;  %v152_v28 = vmul.f32 %v316_v17, %v151_v51  ;;  %v176_v29 = vadd.f32 %v175_v21, %v172_v20  ;;  %v179_v30 = vmul.f32 %v316_v17, %v178_v58 }
  0x42   :  { %v99_v31 = vadd.f32 %v98_v23, %v95_v22  ;;  %v102_v32 = vmul.f32 %v318_v26, %v101_v40  ;;  %v126_v33 = vadd.f32 %v125_v25, %v122_v24  ;;  %v129_v34 = vmul.f32 %v318_v26, %v128_v46 }
  0x43   :  { %v153_v35 = vadd.f32 %v152_v28, %v149_v27  ;;  %v156_v36 = vmul.f32 %v318_v26, %v155_v52  ;;  %v180_v37 = vadd.f32 %v179_v30, %v176_v29  ;;  %v183_v38 = vmul.f32 %v318_v26, %v182_v2 }
  0x44   :  { %v103_v39 = vadd.f32 %v102_v32, %v99_v31  ;;  %v130_v42 = vadd.f32 %v129_v34, %v126_v33  ;;  %v199_v43 = vadd.f32 %v198_v10, %v195_v9  ;;  %v202_v44 = vmul.f32 %v314_v8, %v201_v11 }
  0x45   :  { %v157_v45 = vadd.f32 %v156_v36, %v153_v35  ;;  %v184_v48 = vadd.f32 %v183_v38, %v180_v37  ;;  %v206_v53 = vmul.f32 %v316_v17, %v205_v12  ;;  %v210_v57 = vmul.f32 %v318_v26, %v209_v49 }
  0x46   :  { %v106_v50 = vadd.f32 %v105_v41, %v103_v39  ;;  %v133_v51 = vadd.f32 %v132_v47, %v130_v42  ;;  %v203_v40 = vadd.f32 %v202_v44, %v199_v43  ;;  %v221_v7 = vstv %s292_s25 }
  0x47   :  { %v160_v54 = vadd.f32 %v159_v55, %v157_v45  ;;  %v187_v46 = vadd.f32 %v186_v3, %v184_v48  ;;  %v224_v11 = vstv %s293_s0  ;;  %v228_v14 = vstv %s294_s26 }
  0x48   :  { %v108_v56 = vmul.f32 0.70710677, %v106_v50  ;;  %v135_v52 = vmul.f32 0.70710677, %v133_v51  ;;  %v207_v60 = vadd.f32 %v206_v53, %v203_v40  ;;  %v107_v47 = vmul.f32 0.5, %v106_v50 }
  0x49   :  { %v162_v58 = vmul.f32 0.70710677, %v160_v54  ;;  %v189_v59 = vmul.f32 0.70710677, %v187_v46  ;;  %v134_v0 = vmul.f32 0.5, %v133_v51  ;;  %v161_v3 = vmul.f32 0.5, %v160_v54 }
  0x4a   :  { %319 = verf.f32 %v108_v56  ;;  %v211_v62 = vadd.f32 %v210_v57, %v207_v60  ;;  %v188_v6 = vmul.f32 0.5, %v187_v46  ;;  %v232_v17 = vstv %s295_s27 }
  0x4b   :  { %321 = verf.f32 %v135_v52  ;;  %v236_v27 = vstv %s296_s28  ;;  %v240_v31 = vstv %s297_s29 }
  0x4c   :  { %323 = verf.f32 %v162_v58  ;;  %v214_v63 = vadd.f32 %v213_v61, %v211_v62 }
  0x4d   :  { %325 = verf.f32 %v189_v59 }
  0x4e   :  { %v216_v41 = vmul.f32 0.70710677, %v214_v63  ;;  %v215_v20 = vmul.f32 0.5, %v214_v63 }
  0x50   :  { %327 = verf.f32 %v216_v41 }
  0x57   :  { %v320_v55 = vpop.eup %319 }
  0x58   :  { %v322_v1 = vpop.eup %321  ;;  %v110_v2 = vadd.f32 1.0, %v320_v55 }
  0x59   :  { %v324_v4 = vpop.eup %323  ;;  %v137_v5 = vadd.f32 1.0, %v322_v1 }
  0x5a   :  { %v326_v8 = vpop.eup %325  ;;  %v111_v9 = vmul.f32 %v110_v2, %v107_v47  ;;  %v164_v10 = vadd.f32 1.0, %v324_v4 }
  0x5b   :  { %v138_v12 = vmul.f32 %v137_v5, %v134_v0  ;;  %v191_v13 = vadd.f32 1.0, %v326_v8 }
  0x5c   :  { %v165_v15 = vmul.f32 %v164_v10, %v161_v3  ;;  %v222_v16 = vmul.f32 %v221_v7, %v111_v9 }
  0x5d   :  { %v192_v18 = vmul.f32 %v191_v13, %v188_v6  ;;  %v225_v19 = vmul.f32 %v224_v11, %v138_v12  ;;  %v328_v22 = vpop.eup %327 }
  0x5e   :  { %v229_v21 = vmul.f32 %v228_v14, %v165_v15  ;;  %v218_v25 = vadd.f32 1.0, %v328_v22 }
  0x5f   :  { %v226_v23 = vadd.f32 %v225_v19, %v222_v16  ;;  %v233_v24 = vmul.f32 %v232_v17, %v192_v18 }
  0x60   :  { %v219_v28 = vmul.f32 %v218_v25, %v215_v20 }
  0x61   :  { %v230_v26 = vadd.f32 %v229_v21, %v226_v23 }
  0x62   :  { %v237_v30 = vmul.f32 %v236_v27, %v219_v28 }
  0x63   :  { %v234_v29 = vadd.f32 %v233_v24, %v230_v26 }
  0x65   :  { %v238_v32 = vadd.f32 %v237_v30, %v234_v29 }
  0x67   :  { %v241_v33 = vadd.f32 %v240_v31, %v238_v32 }
  0x69   :  { %242 = vst [vmem:[%s461_s2] sm:$0x1] %v241_v33 }
  0x6a   :  { %247 = vsyncpa [#allocation3], 1 }

</bundles_post_ra>
